<compile_context>
chip_gen: v6e
topology: v6e:2x2x1
jax: 0.10.0
libtpu: 0.0.40
codegen_flags: <defaults>
</compile_context>

<pallas_src>
import jax
import jax.numpy as jnp
from jax.experimental import pallas as pl
from jax.experimental.pallas import tpu as pltpu


def weighted_aggregate_kernel(x_ref, w_ref, out_ref, faw_ref):
    # x_ref : (V, TB, F)  view-major features -> x_ref[v] is a contiguous (TB, F) slab
    # w_ref : (F, F)      attention_weights (resident across grid steps)
    V = x_ref.shape[0]
    w = w_ref[...]

    # Per-view MXU matmul: (TB, F) @ (F, F) with M = TB rows.
    # The torch "aux /= 2 ^ 4" (Python XOR == divide by 6) is folded into the final
    # output scale below; `faw` is invariant to that positive constant.
    auxs = [
        jnp.dot(x_ref[v], w, preferred_element_type=jnp.float32) for v in range(V)
    ]                                                              # V x (TB, F)

    # prod[b, i, j] = <aux_i[b, :], aux_j[b, :]>  -- tiny V: VPU multiply + lane
    # reduction (no aux.T transpose, no sub-tile MXU matmuls). Symmetric -> only
    # the upper triangle is computed.
    prod = [[None] * V for _ in range(V)]
    for i in range(V):
        for j in range(i, V):
            p = jnp.sum(auxs[i] * auxs[j], axis=-1, keepdims=True)  # (TB, 1)
            prod[i][j] = p
            prod[j][i] = p

    # col_sum[b, j] = sum_i relu(prod[b, i, j]);  total[b] = sum_j col_sum[b, j]
    col_sums = []
    for j in range(V):
        cs = jnp.maximum(prod[0][j], 0.0)
        for i in range(1, V):
            cs = cs + jnp.maximum(prod[i][j], 0.0)
        col_sums.append(cs)                                         # V x (TB, 1)
    total = col_sums[0]
    for j in range(1, V):
        total = total + col_sums[j]                                 # (TB, 1)

    # Exact reciprocal (approx=True would risk the 1e-5 faw tolerance).
    # NOTE: like the torch original, total == 0 (all-negative prod) yields NaN;
    # intentionally not guarded to keep forward semantics identical.
    inv_total = 1.0 / total
    faws = [cs * inv_total for cs in col_sums]                      # V x (TB, 1)

    # out[b, :] = (1/6) * sum_v faw[b, v] * aux_v[b, :]   (VPU weighted sum)
    out = faws[0] * auxs[0]
    for v in range(1, V):
        out = out + faws[v] * auxs[v]
    out = out * (1.0 / 6.0)

    out_ref[...] = out.astype(out_ref.dtype)

    # Assemble faw as a single lane-dense (TB, V) slab with broadcast + select
    # (avoids a minor-dim concatenate of (TB, 1) pieces).
    lane = jax.lax.broadcasted_iota(jnp.int32, (1, V), 1)
    faw = jnp.where(lane == 0, faws[0], 0.0)
    for j in range(1, V):
        faw = faw + jnp.where(lane == j, faws[j], 0.0)
    faw_ref[...] = faw.astype(faw_ref.dtype)


def weighted_aggregate(aux_feats, attention_weights, *, block_b=256):
    """aux_feats: (B, V, F) float32 view-features, attention_weights: (F, F) float32.

    Returns (out (B, F), faw (B, V)) matching the torch module's forward.
    """
    B, V, F = aux_feats.shape

    # Batch tile: default 256 MXU rows per per-view matmul (native v6e/v7x tile,
    # multiple of v5e's 128); cap at B, keep the sublane dim 8-aligned when tiling.
    TB = min(block_b, B)
    if TB != B:
        TB = max(8, (TB // 8) * 8)
    Bp = pl.cdiv(B, TB) * TB
    grid = (Bp // TB,)

    # View-major layout: each grid step reads V contiguous (TB, F) slabs and writes
    # lane/sublane-dense (TB, F)/(TB, V) output tiles.  Padded batch rows (zeros)
    # produce NaN faw/out rows that are sliced off below.
    x = jnp.transpose(aux_feats, (1, 0, 2))
    if Bp != B:
        x = jnp.pad(x, ((0, 0), (0, Bp - B), (0, 0)))

    cost = pl.CostEstimate(
        flops=2 * Bp * V * F * F + 2 * Bp * V * V * F,
        transcendentals=0,
        bytes_accessed=4 * (Bp * V * F + F * F + Bp * F + Bp * V),
    )

    # Working set per step: 2*(V*TB*F) + 2*(F*F) + 2*(TB*F) + 2*(TB*V) floats
    # (double-buffered) — ~0.3 MiB at TB=256, F=32, far under even v7x's VMEM.
    out, faw = pl.pallas_call(
        weighted_aggregate_kernel,
        out_shape=(
            jax.ShapeDtypeStruct((Bp, F), aux_feats.dtype),
            jax.ShapeDtypeStruct((Bp, V), aux_feats.dtype),
        ),
        grid=grid,
        in_specs=[
            pl.BlockSpec((V, TB, F), lambda i: (0, i, 0)),
            # Constant index_map -> W stays resident in VMEM across grid steps.
            pl.BlockSpec((F, F), lambda i: (0, 0)),
        ],
        out_specs=(
            pl.BlockSpec((TB, F), lambda i: (i, 0)),
            pl.BlockSpec((TB, V), lambda i: (i, 0)),
        ),
        compiler_params=pltpu.CompilerParams(dimension_semantics=("parallel",)),
        cost_estimate=cost,
    )(x, attention_weights)
    return out[:B], faw[:B]


if __name__ == "__main__":
    key = jax.random.PRNGKey(0)
    B, V, C, D, H, W = 2, 4, 3, 2, 8, 8
    feat_dim = 32

    k1, k2, k3 = jax.random.split(key, 3)
    mvimages = jax.random.normal(k1, (B, V, C, D, H, W), dtype=jnp.float32)

    # attention_weights ~ Uniform(-1, 1): mirrors (r1 - r2) * rand + r2 with r1=-1, r2=1
    attention_weights = jax.random.uniform(
        k2, (feat_dim, feat_dim), minval=-1.0, maxval=1.0, dtype=jnp.float32
    )

    # TODO(synk): `self.model` / `self.lifting_net` are arbitrary user backbones; stand-in
    # here is a deterministic flatten + linear projection to feat_dim in plain-JAX glue
    # (the batch_tensor -> model -> unbatch_tensor path of the original forward).
    proj = jax.random.normal(k3, (C * D * H * W, feat_dim), dtype=jnp.float32) * 0.02
    aux_feats = (mvimages.reshape(B * V, C * D * H * W) @ proj).reshape(B, V, feat_dim)

    def reference(feats, w):
        # pure-JAX reference (same math as the torch module, no Pallas)
        aux = feats @ w / 6.0                                   # "2 ^ 4" is Python XOR == 6
        prod = jnp.einsum("bvf,bwf->bvw", aux, aux)
        relu_res = jnp.maximum(prod, 0.0)
        total = jnp.sum(relu_res, axis=(1, 2), keepdims=True)
        faw = jnp.sum(relu_res / total, axis=1)                 # (B, V)
        out = jnp.einsum("bv,bvf->bf", faw, aux)                # (B, F)
        return out, faw

    out, faw = weighted_aggregate(aux_feats, attention_weights)
    jax.block_until_ready((out, faw))
    out_ref, faw_ref = reference(aux_feats, attention_weights)
    assert jnp.allclose(out, out_ref, atol=1e-4, rtol=1e-4)
    assert jnp.allclose(faw, faw_ref, atol=1e-5, rtol=1e-5)

    # Also exercise the multi-step grid / batch-padding path.
    big_feats = jax.random.normal(jax.random.PRNGKey(1), (20, V, feat_dim), dtype=jnp.float32)
    out2, faw2 = weighted_aggregate(big_feats, attention_weights, block_b=8)
    jax.block_until_ready((out2, faw2))
    out2_ref, faw2_ref = reference(big_feats, attention_weights)
    assert jnp.allclose(out2, out2_ref, atol=1e-4, rtol=1e-4)
    assert jnp.allclose(faw2, faw2_ref, atol=1e-5, rtol=1e-5)

    print("KERNEL_OK")
</pallas_src>

<mosaic_0001>
module attributes {stable_mosaic.version = 11 : i64} {
  func.func @weighted_aggregate_kernel(%arg0: i32, %arg1: memref<4x2x32xf32, #tpu.memory_space<vmem>>, %arg2: memref<32x32xf32, #tpu.memory_space<vmem>>, %arg3: memref<2x32xf32, #tpu.memory_space<vmem>>, %arg4: memref<2x4xf32, #tpu.memory_space<vmem>>) attributes {dimension_semantics = [#tpu.dimension_semantics<parallel>], iteration_bounds = array<i64: 1>, scalar_prefetch = 0 : i64, scratch_operands = 0 : i64, tpu.core_type = #tpu.core_type<tc>, window_params = [{transform_indices = @transform_0, window_bounds = array<i64: 4, 2, 32>}, {pipeline_mode = #tpu.pipeline_mode<synchronous>, transform_indices = @transform_1, window_bounds = array<i64: 32, 32>}, {transform_indices = @transform_2, window_bounds = array<i64: 2, 32>}, {transform_indices = @transform_3, window_bounds = array<i64: 2, 4>}]} {
    %c0 = arith.constant 0 : index
    %c0_0 = arith.constant 0 : index
    %0 = vector.load %arg2[%c0, %c0_0] : memref<32x32xf32, #tpu.memory_space<vmem>>, vector<32x32xf32>
    %c0_1 = arith.constant 0 : index
    %c0_2 = arith.constant 0 : index
    %c0_3 = arith.constant 0 : index
    %1 = vector.load %arg1[%c0_1, %c0_2, %c0_3] : memref<4x2x32xf32, #tpu.memory_space<vmem>>, vector<1x2x32xf32>
    %2 = vector.shape_cast %1 : vector<1x2x32xf32> to vector<2x32xf32>
    %cst = arith.constant dense<0.000000e+00> : vector<2x32xf32>
    %3 = tpu.matmul %2, %0, %cst {dimension_numbers = #tpu.dot_dimension_numbers<[1], [0], [0], [1], [0, 0, 1, 1], [], []>} : vector<2x32xf32>, vector<32x32xf32>, vector<2x32xf32> -> vector<2x32xf32>
    %c1 = arith.constant 1 : index
    %c0_4 = arith.constant 0 : index
    %c0_5 = arith.constant 0 : index
    %4 = vector.load %arg1[%c1, %c0_4, %c0_5] : memref<4x2x32xf32, #tpu.memory_space<vmem>>, vector<1x2x32xf32>
    %5 = vector.shape_cast %4 : vector<1x2x32xf32> to vector<2x32xf32>
    %cst_6 = arith.constant dense<0.000000e+00> : vector<2x32xf32>
    %6 = tpu.matmul %5, %0, %cst_6 {dimension_numbers = #tpu.dot_dimension_numbers<[1], [0], [0], [1], [0, 0, 1, 1], [], []>} : vector<2x32xf32>, vector<32x32xf32>, vector<2x32xf32> -> vector<2x32xf32>
    %c2 = arith.constant 2 : index
    %c0_7 = arith.constant 0 : index
    %c0_8 = arith.constant 0 : index
    %7 = vector.load %arg1[%c2, %c0_7, %c0_8] : memref<4x2x32xf32, #tpu.memory_space<vmem>>, vector<1x2x32xf32>
    %8 = vector.shape_cast %7 : vector<1x2x32xf32> to vector<2x32xf32>
    %cst_9 = arith.constant dense<0.000000e+00> : vector<2x32xf32>
    %9 = tpu.matmul %8, %0, %cst_9 {dimension_numbers = #tpu.dot_dimension_numbers<[1], [0], [0], [1], [0, 0, 1, 1], [], []>} : vector<2x32xf32>, vector<32x32xf32>, vector<2x32xf32> -> vector<2x32xf32>
    %c3 = arith.constant 3 : index
    %c0_10 = arith.constant 0 : index
    %c0_11 = arith.constant 0 : index
    %10 = vector.load %arg1[%c3, %c0_10, %c0_11] : memref<4x2x32xf32, #tpu.memory_space<vmem>>, vector<1x2x32xf32>
    %11 = vector.shape_cast %10 : vector<1x2x32xf32> to vector<2x32xf32>
    %cst_12 = arith.constant dense<0.000000e+00> : vector<2x32xf32>
    %12 = tpu.matmul %11, %0, %cst_12 {dimension_numbers = #tpu.dot_dimension_numbers<[1], [0], [0], [1], [0, 0, 1, 1], [], []>} : vector<2x32xf32>, vector<32x32xf32>, vector<2x32xf32> -> vector<2x32xf32>
    %13 = arith.mulf %3, %3 : vector<2x32xf32>
    %cst_13 = arith.constant dense<0.000000e+00> : vector<2xf32>
    %14 = vector.multi_reduction <add>, %13, %cst_13 [1] : vector<2x32xf32> to vector<2xf32>
    %15 = vector.shape_cast %14 : vector<2xf32> to vector<2x1xf32>
    %16 = arith.mulf %3, %6 : vector<2x32xf32>
    %cst_14 = arith.constant dense<0.000000e+00> : vector<2xf32>
    %17 = vector.multi_reduction <add>, %16, %cst_14 [1] : vector<2x32xf32> to vector<2xf32>
    %18 = vector.shape_cast %17 : vector<2xf32> to vector<2x1xf32>
    %19 = arith.mulf %3, %9 : vector<2x32xf32>
    %cst_15 = arith.constant dense<0.000000e+00> : vector<2xf32>
    %20 = vector.multi_reduction <add>, %19, %cst_15 [1] : vector<2x32xf32> to vector<2xf32>
    %21 = vector.shape_cast %20 : vector<2xf32> to vector<2x1xf32>
    %22 = arith.mulf %3, %12 : vector<2x32xf32>
    %cst_16 = arith.constant dense<0.000000e+00> : vector<2xf32>
    %23 = vector.multi_reduction <add>, %22, %cst_16 [1] : vector<2x32xf32> to vector<2xf32>
    %24 = vector.shape_cast %23 : vector<2xf32> to vector<2x1xf32>
    %25 = arith.mulf %6, %6 : vector<2x32xf32>
    %cst_17 = arith.constant dense<0.000000e+00> : vector<2xf32>
    %26 = vector.multi_reduction <add>, %25, %cst_17 [1] : vector<2x32xf32> to vector<2xf32>
    %27 = vector.shape_cast %26 : vector<2xf32> to vector<2x1xf32>
    %28 = arith.mulf %6, %9 : vector<2x32xf32>
    %cst_18 = arith.constant dense<0.000000e+00> : vector<2xf32>
    %29 = vector.multi_reduction <add>, %28, %cst_18 [1] : vector<2x32xf32> to vector<2xf32>
    %30 = vector.shape_cast %29 : vector<2xf32> to vector<2x1xf32>
    %31 = arith.mulf %6, %12 : vector<2x32xf32>
    %cst_19 = arith.constant dense<0.000000e+00> : vector<2xf32>
    %32 = vector.multi_reduction <add>, %31, %cst_19 [1] : vector<2x32xf32> to vector<2xf32>
    %33 = vector.shape_cast %32 : vector<2xf32> to vector<2x1xf32>
    %34 = arith.mulf %9, %9 : vector<2x32xf32>
    %cst_20 = arith.constant dense<0.000000e+00> : vector<2xf32>
    %35 = vector.multi_reduction <add>, %34, %cst_20 [1] : vector<2x32xf32> to vector<2xf32>
    %36 = vector.shape_cast %35 : vector<2xf32> to vector<2x1xf32>
    %37 = arith.mulf %9, %12 : vector<2x32xf32>
    %cst_21 = arith.constant dense<0.000000e+00> : vector<2xf32>
    %38 = vector.multi_reduction <add>, %37, %cst_21 [1] : vector<2x32xf32> to vector<2xf32>
    %39 = vector.shape_cast %38 : vector<2xf32> to vector<2x1xf32>
    %40 = arith.mulf %12, %12 : vector<2x32xf32>
    %cst_22 = arith.constant dense<0.000000e+00> : vector<2xf32>
    %41 = vector.multi_reduction <add>, %40, %cst_22 [1] : vector<2x32xf32> to vector<2xf32>
    %42 = vector.shape_cast %41 : vector<2xf32> to vector<2x1xf32>
    %cst_23 = arith.constant 0.000000e+00 : f32
    %43 = vector.broadcast %cst_23 : f32 to vector<2x1xf32>
    %44 = arith.maximumf %15, %43 : vector<2x1xf32>
    %cst_24 = arith.constant 0.000000e+00 : f32
    %45 = vector.broadcast %cst_24 : f32 to vector<2x1xf32>
    %46 = arith.maximumf %18, %45 : vector<2x1xf32>
    %47 = arith.addf %44, %46 : vector<2x1xf32>
    %cst_25 = arith.constant 0.000000e+00 : f32
    %48 = vector.broadcast %cst_25 : f32 to vector<2x1xf32>
    %49 = arith.maximumf %21, %48 : vector<2x1xf32>
    %50 = arith.addf %47, %49 : vector<2x1xf32>
    %cst_26 = arith.constant 0.000000e+00 : f32
    %51 = vector.broadcast %cst_26 : f32 to vector<2x1xf32>
    %52 = arith.maximumf %24, %51 : vector<2x1xf32>
    %53 = arith.addf %50, %52 : vector<2x1xf32>
    %cst_27 = arith.constant 0.000000e+00 : f32
    %54 = vector.broadcast %cst_27 : f32 to vector<2x1xf32>
    %55 = arith.maximumf %18, %54 : vector<2x1xf32>
    %cst_28 = arith.constant 0.000000e+00 : f32
    %56 = vector.broadcast %cst_28 : f32 to vector<2x1xf32>
    %57 = arith.maximumf %27, %56 : vector<2x1xf32>
    %58 = arith.addf %55, %57 : vector<2x1xf32>
    %cst_29 = arith.constant 0.000000e+00 : f32
    %59 = vector.broadcast %cst_29 : f32 to vector<2x1xf32>
    %60 = arith.maximumf %30, %59 : vector<2x1xf32>
    %61 = arith.addf %58, %60 : vector<2x1xf32>
    %cst_30 = arith.constant 0.000000e+00 : f32
    %62 = vector.broadcast %cst_30 : f32 to vector<2x1xf32>
    %63 = arith.maximumf %33, %62 : vector<2x1xf32>
    %64 = arith.addf %61, %63 : vector<2x1xf32>
    %cst_31 = arith.constant 0.000000e+00 : f32
    %65 = vector.broadcast %cst_31 : f32 to vector<2x1xf32>
    %66 = arith.maximumf %21, %65 : vector<2x1xf32>
    %cst_32 = arith.constant 0.000000e+00 : f32
    %67 = vector.broadcast %cst_32 : f32 to vector<2x1xf32>
    %68 = arith.maximumf %30, %67 : vector<2x1xf32>
    %69 = arith.addf %66, %68 : vector<2x1xf32>
    %cst_33 = arith.constant 0.000000e+00 : f32
    %70 = vector.broadcast %cst_33 : f32 to vector<2x1xf32>
    %71 = arith.maximumf %36, %70 : vector<2x1xf32>
    %72 = arith.addf %69, %71 : vector<2x1xf32>
    %cst_34 = arith.constant 0.000000e+00 : f32
    %73 = vector.broadcast %cst_34 : f32 to vector<2x1xf32>
    %74 = arith.maximumf %39, %73 : vector<2x1xf32>
    %75 = arith.addf %72, %74 : vector<2x1xf32>
    %cst_35 = arith.constant 0.000000e+00 : f32
    %76 = vector.broadcast %cst_35 : f32 to vector<2x1xf32>
    %77 = arith.maximumf %24, %76 : vector<2x1xf32>
    %cst_36 = arith.constant 0.000000e+00 : f32
    %78 = vector.broadcast %cst_36 : f32 to vector<2x1xf32>
    %79 = arith.maximumf %33, %78 : vector<2x1xf32>
    %80 = arith.addf %77, %79 : vector<2x1xf32>
    %cst_37 = arith.constant 0.000000e+00 : f32
    %81 = vector.broadcast %cst_37 : f32 to vector<2x1xf32>
    %82 = arith.maximumf %39, %81 : vector<2x1xf32>
    %83 = arith.addf %80, %82 : vector<2x1xf32>
    %cst_38 = arith.constant 0.000000e+00 : f32
    %84 = vector.broadcast %cst_38 : f32 to vector<2x1xf32>
    %85 = arith.maximumf %42, %84 : vector<2x1xf32>
    %86 = arith.addf %83, %85 : vector<2x1xf32>
    %87 = arith.addf %53, %64 : vector<2x1xf32>
    %88 = arith.addf %87, %75 : vector<2x1xf32>
    %89 = arith.addf %88, %86 : vector<2x1xf32>
    %cst_39 = arith.constant 1.000000e+00 : f32
    %90 = vector.broadcast %cst_39 : f32 to vector<2x1xf32>
    %91 = arith.divf %90, %89 : vector<2x1xf32>
    %92 = arith.mulf %53, %91 : vector<2x1xf32>
    %93 = arith.mulf %64, %91 : vector<2x1xf32>
    %94 = arith.mulf %75, %91 : vector<2x1xf32>
    %95 = arith.mulf %86, %91 : vector<2x1xf32>
    %96 = vector.broadcast %92 : vector<2x1xf32> to vector<2x32xf32>
    %97 = arith.mulf %96, %3 : vector<2x32xf32>
    %98 = vector.broadcast %93 : vector<2x1xf32> to vector<2x32xf32>
    %99 = arith.mulf %98, %6 : vector<2x32xf32>
    %100 = arith.addf %97, %99 : vector<2x32xf32>
    %101 = vector.broadcast %94 : vector<2x1xf32> to vector<2x32xf32>
    %102 = arith.mulf %101, %9 : vector<2x32xf32>
    %103 = arith.addf %100, %102 : vector<2x32xf32>
    %104 = vector.broadcast %95 : vector<2x1xf32> to vector<2x32xf32>
    %105 = arith.mulf %104, %12 : vector<2x32xf32>
    %106 = arith.addf %103, %105 : vector<2x32xf32>
    %cst_40 = arith.constant 0.166666672 : f32
    %107 = vector.broadcast %cst_40 : f32 to vector<2x32xf32>
    %108 = arith.mulf %106, %107 : vector<2x32xf32>
    %c0_41 = arith.constant 0 : index
    %c0_42 = arith.constant 0 : index
    %109 = vector.load %arg3[%c0_41, %c0_42] : memref<2x32xf32, #tpu.memory_space<vmem>>, vector<2x32xf32>
    tpu.vector_store %arg3[%c0_41, %c0_42], %108 {strides = array<i32>} : memref<2x32xf32, #tpu.memory_space<vmem>>, vector<2x32xf32>,
    %110 = tpu.iota {dimensions = array<i32: 1>} : vector<1x4xi32>
    %c0_i32 = arith.constant 0 : i32
    %111 = vector.broadcast %c0_i32 : i32 to vector<1x4xi32>
    %112 = arith.cmpi eq, %110, %111 : vector<1x4xi32>
    %cst_43 = arith.constant 0.000000e+00 : f32
    %113 = vector.shape_cast %112 : vector<1x4xi1> to vector<1x4xi1>
    %114 = vector.broadcast %113 : vector<1x4xi1> to vector<2x4xi1>
    %115 = vector.shape_cast %92 : vector<2x1xf32> to vector<2x1xf32>
    %116 = vector.broadcast %115 : vector<2x1xf32> to vector<2x4xf32>
    %117 = vector.broadcast %cst_43 : f32 to vector<2x4xf32>
    %118 = arith.select %114, %116, %117 : vector<2x4xi1>, vector<2x4xf32>
    %c1_i32 = arith.constant 1 : i32
    %119 = vector.broadcast %c1_i32 : i32 to vector<1x4xi32>
    %120 = arith.cmpi eq, %110, %119 : vector<1x4xi32>
    %cst_44 = arith.constant 0.000000e+00 : f32
    %121 = vector.shape_cast %120 : vector<1x4xi1> to vector<1x4xi1>
    %122 = vector.broadcast %121 : vector<1x4xi1> to vector<2x4xi1>
    %123 = vector.shape_cast %93 : vector<2x1xf32> to vector<2x1xf32>
    %124 = vector.broadcast %123 : vector<2x1xf32> to vector<2x4xf32>
    %125 = vector.broadcast %cst_44 : f32 to vector<2x4xf32>
    %126 = arith.select %122, %124, %125 : vector<2x4xi1>, vector<2x4xf32>
    %127 = arith.addf %118, %126 : vector<2x4xf32>
    %c2_i32 = arith.constant 2 : i32
    %128 = vector.broadcast %c2_i32 : i32 to vector<1x4xi32>
    %129 = arith.cmpi eq, %110, %128 : vector<1x4xi32>
    %cst_45 = arith.constant 0.000000e+00 : f32
    %130 = vector.shape_cast %129 : vector<1x4xi1> to vector<1x4xi1>
    %131 = vector.broadcast %130 : vector<1x4xi1> to vector<2x4xi1>
    %132 = vector.shape_cast %94 : vector<2x1xf32> to vector<2x1xf32>
    %133 = vector.broadcast %132 : vector<2x1xf32> to vector<2x4xf32>
    %134 = vector.broadcast %cst_45 : f32 to vector<2x4xf32>
    %135 = arith.select %131, %133, %134 : vector<2x4xi1>, vector<2x4xf32>
    %136 = arith.addf %127, %135 : vector<2x4xf32>
    %c3_i32 = arith.constant 3 : i32
    %137 = vector.broadcast %c3_i32 : i32 to vector<1x4xi32>
    %138 = arith.cmpi eq, %110, %137 : vector<1x4xi32>
    %cst_46 = arith.constant 0.000000e+00 : f32
    %139 = vector.shape_cast %138 : vector<1x4xi1> to vector<1x4xi1>
    %140 = vector.broadcast %139 : vector<1x4xi1> to vector<2x4xi1>
    %141 = vector.shape_cast %95 : vector<2x1xf32> to vector<2x1xf32>
    %142 = vector.broadcast %141 : vector<2x1xf32> to vector<2x4xf32>
    %143 = vector.broadcast %cst_46 : f32 to vector<2x4xf32>
    %144 = arith.select %140, %142, %143 : vector<2x4xi1>, vector<2x4xf32>
    %145 = arith.addf %136, %144 : vector<2x4xf32>
    %c0_47 = arith.constant 0 : index
    %c0_48 = arith.constant 0 : index
    %146 = vector.load %arg4[%c0_47, %c0_48] : memref<2x4xf32, #tpu.memory_space<vmem>>, vector<2x4xf32>
    tpu.vector_store %arg4[%c0_47, %c0_48], %145 {strides = array<i32>} : memref<2x4xf32, #tpu.memory_space<vmem>>, vector<2x4xf32>,
    return
  }
  func.func @transform_0(%arg0: i32) -> (i32, i32, i32) {
    %c0_i32 = arith.constant 0 : i32
    %c0_i32_0 = arith.constant 0 : i32
    %c0_i32_1 = arith.constant 0 : i32
    return %c0_i32, %arg0, %c0_i32_0 : i32, i32, i32
  }
  func.func @transform_1(%arg0: i32) -> (i32, i32) {
    %c0_i32 = arith.constant 0 : i32
    %c0_i32_0 = arith.constant 0 : i32
    %c0_i32_1 = arith.constant 0 : i32
    return %c0_i32, %c0_i32_0 : i32, i32
  }
  func.func @transform_2(%arg0: i32) -> (i32, i32) {
    %c0_i32 = arith.constant 0 : i32
    %c0_i32_0 = arith.constant 0 : i32
    return %arg0, %c0_i32 : i32, i32
  }
  func.func @transform_3(%arg0: i32) -> (i32, i32) {
    %c0_i32 = arith.constant 0 : i32
    %c0_i32_0 = arith.constant 0 : i32
    return %arg0, %c0_i32 : i32, i32
  }
}

</mosaic_0001>

<bundles_post_ra>
// kernel: tpu_custom_call.1
= control target key start
LH: loop header
LB: loop body
LE: loop exit
PB: predicated region body
PF: predicated region fallthrough
CT: control target
= control target key end

     0   :  { %9 = vsyncpa [#allocation3], 0  ;;  %s742_s0 = inlined_call_operand.hbm [shape: f32[4,2,32], index: 0, kind: input, shape index: {}]   ;;  %s743_s1 = inlined_call_operand.hbm [shape: f32[32,32], index: 1, kind: input, shape index: {}]   ;;  %s744_s2 = inlined_call_operand.hbm [shape: f32[2,32], index: 2, kind: output, shape index: {0}]   ;;  %s745_s3 = inlined_call_operand.hbm [shape: f32[2,4], index: 3, kind: output, shape index: {1}]  }
   0x1   :  { %10 = vsyncpa [#allocation6], 0 }
   0x2   :  { %11 = vsyncpa [#allocation4], 0 }
   0x3   :  { %12 = vsyncpa [#allocation9], 0  ;;  %s649_s12 = smov [#allocation2]  }
   0x4   :  { %s18_s13 = sshll.u32 %s649_s12, 4  ;;  %s19_s13 = int_to_ptr.vmem [resolvable:$true] %s18_s13 }
   0x5   :  { %s569_s14 = scalar_lea.vmem %s19_s13, 128  ;;  %p574_p1 = scmp.lt.s32.totalorder %s19_s13, %s19_s13 }
   0x6   :  { %p570_p0 = scmp.ne.s32.totalorder %s19_s13, %s569_s14  ;;  %p575_p2 = scmp.lt.s32.totalorder %s569_s14, %s569_s14 }
   0x8   :  { %p576_p3 = por %p575_p2, %p574_p1 }
   0xa   :  { %p577_p4 = pnand %p576_p3, %p570_p0 }
   0xc   :  { %580 = shalt.err (!%p577_p4)
}
   0xd   :  { %s650_s15 = smov 32   ;;  %s651_s16 = smov 2  }
   0xe   :  { %24 = dma.hbm_to_vmem [thread:$0]  %s742_s0, 128, %s19_s13, [#allocation3], %s650_s15, %s650_s15, %s651_s16  }
   0xf   :  { %s652_s19 = smov [#allocation5]  }
  0x10   :  { %s30_s20 = sshll.u32 %s652_s19, 4  ;;  %s31_s20 = int_to_ptr.vmem [resolvable:$true] %s30_s20 }
  0x11   :  { %s589_s21 = scalar_lea.vmem %s31_s20, 512  ;;  %p594_p6 = scmp.lt.s32.totalorder %s31_s20, %s31_s20 }
  0x12   :  { %p590_p5 = scmp.ne.s32.totalorder %s31_s20, %s589_s21  ;;  %p595_p7 = scmp.lt.s32.totalorder %s589_s21, %s589_s21 }
  0x14   :  { %p596_p8 = por %p595_p7, %p594_p6 }
  0x16   :  { %p597_p9 = pnand %p596_p8, %p590_p5 }
  0x18   :  { %600 = shalt.err (!%p597_p9)
}
  0x19   :  { %s653_s22 = smov 128   ;;  %s654_s23 = smov 8  }
  0x1a   :  { %36 = dma.hbm_to_vmem [thread:$0]  %s743_s1, 512, %s31_s20, [#allocation6], %s653_s22, %s653_s22, %s654_s23  }
  0x1b   :  { %641 = dma.done.wait [#allocation3], 128  }
  0x1c   :  { %642 = vsyncadd [#allocation3], 4294967168 }
  0x1d   :  { %643 = dma.done.wait [#allocation6], 512  }
  0x1e   :  { %644 = vsyncadd [#allocation6], 4294966784  ;;  %v655_v0 = vmov 0.0   ;;  %vm656_vm0 = vmmov 0   ;;  %v46_v1 = vld [vmem:[#allocation5 + $0x18] sm:$0xff]  ;;  %v45_v2 = vld [vmem:[#allocation5 + $0x10] sm:$0xff] }
  0x1f   :  { %505 = vmatprep.subr.mxu0 %v655_v0  ;;  %516 = vmatprep.subr.mxu1 %v655_v0  ;;  %v44_v3 = vld [vmem:[#allocation5 + $0x8] sm:$0xff]  ;;  %v43_v4 = vld [vmem:[#allocation5] sm:$0xff]  ;;  %v47_v5 = vld [vmem:[#allocation2] sm:$0x3]  ;;  %vm48_vm1 = vcmask 261120   ;;  %vm348_vm2 = vcmask 254976  }
  0x20   :  { %513 = vmatprep.mubr.msk.f32.mxu0 %vm656_vm0, %v655_v0  ;;  %524 = vmatprep.mubr.msk.f32.mxu1 %vm656_vm0, %v655_v0  ;;  %v123_v6 = vld [vmem:[#allocation2 + $0x2] sm:$0x3]  ;;  %v198_v7 = vld [vmem:[#allocation2 + $0x4] sm:$0x3]  ;;  %v273_v8 = vld [vmem:[#allocation2 + $0x6] sm:$0x3] }
  0x21   :  { %506 = vmatpush3.msra.mxu0 %v46_v1  ;;  %517 = vmatpush3.msra.mxu1 %v46_v1  ;;  %s657_s0 = smov [#allocation8]   ;;  %s658_s26 = smov [#allocation7]   ;;  %vm449_vm7 = vcmask 25600  }
  0x22   :  { %507 = vmatprep.subr.mxu0 %v655_v0  ;;  %518 = vmatprep.subr.mxu1 %v655_v0  ;;  %s467_s1 = sshll.u32 %s657_s0, 4  ;;  %s457_s27 = sshll.u32 %s658_s26, 4  ;;  %s468_s1 = int_to_ptr.vmem [resolvable:$true] %s467_s1  ;;  %s458_s27 = int_to_ptr.vmem [resolvable:$true] %s457_s27 }
  0x23   :  { %508 = vmatpush3.msra.mxu0 %v45_v2  ;;  %519 = vmatpush3.msra.mxu1 %v45_v2  ;;  %s601_s28 = scalar_lea.vmem %s468_s1, 32  ;;  %p606_p11 = scmp.lt.s32.totalorder %s468_s1, %s468_s1 }
  0x24   :  { %509 = vmatprep.subr.mxu0 %v655_v0  ;;  %520 = vmatprep.subr.mxu1 %v655_v0  ;;  %p602_p10 = scmp.ne.s32.totalorder %s468_s1, %s601_s28  ;;  %p607_p12 = scmp.lt.s32.totalorder %s601_s28, %s601_s28 }
  0x25   :  { %510 = vmatpush3.msra.mxu0 %v44_v3  ;;  %521 = vmatpush3.msra.mxu1 %v44_v3 }
  0x26   :  { %511 = vmatprep.subr.mxu0 %v655_v0  ;;  %522 = vmatprep.subr.mxu1 %v655_v0  ;;  %p608_p13 = por %p607_p12, %p606_p11 }
  0x27   :  { %512 = vmatpush3.msra.mxu0 %v43_v4  ;;  %523 = vmatpush3.msra.mxu1 %v43_v4 }
  0x28   :  { %514 = vmatmul.mubr.msk.f32.vlgmr.msra.gmra.mxu0 %vm48_vm1, %v47_v5  ;;  %527 = vmatprep.subr.mxu0 %v655_v0  ;;  %p609_p0 = pnand %p608_p13, %p602_p10 }
  0x29   :  { %538 = vmatprep.subr.mxu1 %v655_v0  ;;  %525 = vmatmul.mubr.msk.f32.vlgmr.msra.gmra.mxu1 %vm48_vm1, %v123_v6 }
  0x2a   :  { %528 = vmatpush3.msra.mxu0 %v46_v1  ;;  %539 = vmatpush3.msra.mxu1 %v46_v1 }
  0x2b   :  { %529 = vmatprep.subr.mxu0 %v655_v0  ;;  %540 = vmatprep.subr.mxu1 %v655_v0 }
  0x2c   :  { %530 = vmatpush3.msra.mxu0 %v45_v2  ;;  %541 = vmatpush3.msra.mxu1 %v45_v2 }
  0x2d   :  { %531 = vmatprep.subr.mxu0 %v655_v0  ;;  %542 = vmatprep.subr.mxu1 %v655_v0 }
  0x2e   :  { %532 = vmatpush3.msra.mxu0 %v44_v3  ;;  %543 = vmatpush3.msra.mxu1 %v44_v3 }
  0x2f   :  { %533 = vmatprep.subr.mxu0 %v655_v0  ;;  %544 = vmatprep.subr.mxu1 %v655_v0 }
  0x30   :  { %534 = vmatpush3.msra.mxu0 %v43_v4  ;;  %535 = vmatprep.mubr.msk.f32.mxu0 %vm656_vm0, %v655_v0 }
  0x31   :  { %545 = vmatpush3.msra.mxu1 %v43_v4  ;;  %546 = vmatprep.mubr.msk.f32.mxu1 %vm656_vm0, %v655_v0 }
  0x32   :  { %536 = vmatmul.mubr.msk.f32.vlgmr.msra.gmra.mxu0 %vm48_vm1, %v198_v7  ;;  %547 = vmatmul.mubr.msk.f32.vlgmr.msra.gmra.mxu1 %vm48_vm1, %v273_v8  ;;  %v428_v8 = vlaneseq }
  0xe8   :  { %v693_v9 = vpop.f32.mrf.mxu0 }
  0xe9   :  { %v695_v10 = vpop.f32.mrf.mxu1  ;;  %v347_v11 = vmul.f32 %v693_v9, %v693_v9 }
  0xea   :  { %v515_v12 = vpop.f32.mrf.mxu0  ;;  %v364_v13 = vmul.f32 %v695_v10, %v695_v10  ;;  %v352_v16 = vmul.f32 %v695_v10, %v693_v9 }
  0xeb   :  { %v526_v14 = vpop.f32.mrf.mxu1  ;;  %v349_v15 = vsel %vm348_vm2, %v347_v11, 0.0  ;;  %v429_v11 = vand.u32 127, %v428_v8 }
  0xec   :  { %350 = vadd.xlane.f32.xlu0 %v349_v15  ;;  %v365_v17 = vsel %vm348_vm2, %v364_v13, 0.0  ;;  %v353_v18 = vsel %vm348_vm2, %v352_v16, 0.0 }
  0xed   :  { %366 = vadd.xlane.f32.xlu1 %v365_v17  ;;  %vm430_vm3 = vcmp.eq.s32.totalorder %v429_v11, 0  ;;  %vm434_vm4 = vcmp.eq.s32.totalorder %v429_v11, 1  ;;  %vm439_vm5 = vcmp.eq.s32.totalorder %v429_v11, 2  ;;  %vm444_vm6 = vcmp.eq.s32.totalorder %v429_v11, 3 }
  0xf0   :  { %354 = vadd.xlane.f32.xlu0 %v353_v18 }
  0xf2   :  { %v706_v19 = vpop.f32.mrf.mxu1  ;;  %v708_v20 = vpop.f32.mrf.mxu0 }
  0xf3   :  { %v368_v21 = vmul.f32 %v708_v20, %v695_v10  ;;  %v356_v22 = vmul.f32 %v708_v20, %v693_v9  ;;  %v372_v27 = vmul.f32 %v706_v19, %v695_v10  ;;  %v360_v28 = vmul.f32 %v706_v19, %v693_v9 }
  0xf4   :  { %v537_v23 = vpop.f32.mrf.mxu0  ;;  %v548_v24 = vpop.f32.mrf.mxu1  ;;  %v380_v31 = vmul.f32 %v706_v19, %v708_v20  ;;  %v376_v32 = vmul.f32 %v708_v20, %v708_v20  ;;  %v384_v35 = vmul.f32 %v706_v19, %v706_v19 }
  0xf5   :  { %v369_v25 = vsel %vm348_vm2, %v368_v21, 0.0  ;;  %v357_v26 = vsel %vm348_vm2, %v356_v22, 0.0  ;;  %v373_v29 = vsel %vm348_vm2, %v372_v27, 0.0  ;;  %v361_v30 = vsel %vm348_vm2, %v360_v28, 0.0 }
  0xf6   :  { %370 = vadd.xlane.f32.xlu0 %v369_v25  ;;  %358 = vadd.xlane.f32.xlu1 %v357_v26  ;;  %v381_v33 = vsel %vm348_vm2, %v380_v31, 0.0  ;;  %v377_v34 = vsel %vm348_vm2, %v376_v32, 0.0  ;;  %v385_v36 = vsel %vm348_vm2, %v384_v35, 0.0 }
  0xfa   :  { %374 = vadd.xlane.f32.xlu0 %v373_v29  ;;  %362 = vadd.xlane.f32.xlu1 %v361_v30 }
  0xfe   :  { %382 = vadd.xlane.f32.xlu0 %v381_v33  ;;  %378 = vadd.xlane.f32.xlu1 %v377_v34 }
 0x102   :  { %386 = vadd.xlane.f32.xlu1 %v385_v36 }
 0x175   :  { %v351_v37 = vpop.xlane.xlu0 %350 }
 0x176   :  { %v367_v38 = vpop.xlane.xlu1 %366  ;;  %v388_v44 = vmax.f32 %v351_v37, 0.0 }
 0x177   :  { %v395_v42 = vmax.f32 %v367_v38, 0.0 }
 0x179   :  { %v355_v39 = vpop.xlane.xlu0 %354 }
 0x17a   :  { %v389_v43 = vmax.f32 %v355_v39, 0.0 }
 0x17c   :  { %v390_v49 = vadd.f32 %v389_v43, %v388_v44  ;;  %v396_v50 = vadd.f32 %v395_v42, %v389_v43 }
 0x17f   :  { %v371_v40 = vpop.xlane.xlu0 %370  ;;  %v359_v41 = vpop.xlane.xlu1 %358 }
 0x180   :  { %v397_v45 = vmax.f32 %v371_v40, 0.0  ;;  %v391_v46 = vmax.f32 %v359_v41, 0.0 }
 0x182   :  { %v398_v53 = vadd.f32 %v397_v45, %v396_v50  ;;  %v392_v54 = vadd.f32 %v391_v46, %v390_v49  ;;  %v401_v55 = vadd.f32 %v397_v45, %v391_v46 }
 0x183   :  { %v375_v47 = vpop.xlane.xlu0 %374  ;;  %v363_v48 = vpop.xlane.xlu1 %362 }
 0x184   :  { %v399_v51 = vmax.f32 %v375_v47, 0.0  ;;  %v393_v52 = vmax.f32 %v363_v48, 0.0 }
 0x186   :  { %v400_v58 = vadd.f32 %v399_v51, %v398_v53  ;;  %v394_v59 = vadd.f32 %v393_v52, %v392_v54  ;;  %v406_v62 = vadd.f32 %v399_v51, %v393_v52 }
 0x187   :  { %v383_v56 = vpop.xlane.xlu0 %382  ;;  %v379_v57 = vpop.xlane.xlu1 %378 }
 0x188   :  { %v404_v60 = vmax.f32 %v383_v56, 0.0  ;;  %v402_v61 = vmax.f32 %v379_v57, 0.0  ;;  %v410_v1 = vadd.f32 %v400_v58, %v394_v59 }
 0x18a   :  { %v403_v63 = vadd.f32 %v402_v61, %v401_v55  ;;  %v407_v2 = vadd.f32 %v406_v62, %v404_v60 }
 0x18b   :  { %v387_v0 = vpop.xlane.xlu1 %386 }
 0x18c   :  { %v405_v3 = vadd.f32 %v404_v60, %v403_v63  ;;  %v408_v4 = vmax.f32 %v387_v0, 0.0 }
 0x18e   :  { %v411_v5 = vadd.f32 %v410_v1, %v405_v3  ;;  %v409_v6 = vadd.f32 %v408_v4, %v407_v2 }
 0x190   :  { %v412_v7 = vadd.f32 %v411_v5, %v409_v6 }
 0x192   :  { %559 = vrcp.f32 %v412_v7 }
 0x19f   :  { %v560_v12 = vpop.eup %559 }
 0x1a0   :  { %v415_v13 = vmul.f32 %v560_v12, %v394_v59  ;;  %v416_v14 = vmul.f32 %v560_v12, %v400_v58  ;;  %v417_v15 = vmul.f32 %v560_v12, %v405_v3  ;;  %v418_v16 = vmul.f32 %v560_v12, %v409_v6 }
 0x1a2   :  { %v419_v17 = vmul.f32 %v415_v13, %v693_v9  ;;  %v420_v18 = vmul.f32 %v416_v14, %v695_v10  ;;  %v433_v21 = vsel %vm430_vm3, %v415_v13, 0.0  ;;  %v437_v22 = vsel %vm434_vm4, %v416_v14, 0.0 }
 0x1a3   :  { %v422_v24 = vmul.f32 %v417_v15, %v708_v20  ;;  %v438_v25 = vadd.f32 %v437_v22, %v433_v21  ;;  %v442_v26 = vsel %vm439_vm5, %v417_v15, 0.0  ;;  %v424_v27 = vmul.f32 %v418_v16, %v706_v19 }
 0x1a4   :  { %v421_v23 = vadd.f32 %v420_v18, %v419_v17  ;;  %v447_v30 = vsel %vm444_vm6, %v418_v16, 0.0 }
 0x1a5   :  { %v443_v29 = vadd.f32 %v442_v26, %v438_v25 }
 0x1a6   :  { %v423_v28 = vadd.f32 %v422_v24, %v421_v23 }
 0x1a7   :  { %v448_v10 = vadd.f32 %v447_v30, %v443_v29 }
 0x1a8   :  { %v425_v9 = vadd.f32 %v424_v27, %v423_v28 }
 0x1a9   :  { %450 = vst.msk [vmem:[#allocation8] sm:$0x3] %vm449_vm7, %v448_v10 }
 0x1aa   :  { %v426_v31 = vmul.f32 0.16666667, %v425_v9 }
 0x1ab   :  { %612 = shalt.err (!%p609_p0)
}
 0x1ac   :  { %470 = dma.vmem_to_hbm [thread:$0]  %s468_s1, 32, %s745_s3, [#allocation9]   ;;  %427 = vst.msk [vmem:[#allocation7] sm:$0x3] %vm348_vm2, %v426_v31 }
 0x1ad   :  { %s621_s4 = scalar_lea.vmem %s458_s27, 32  ;;  %p626_p2 = scmp.lt.s32.totalorder %s458_s27, %s458_s27 }
 0x1ae   :  { %p622_p1 = scmp.ne.s32.totalorder %s458_s27, %s621_s4  ;;  %p627_p3 = scmp.lt.s32.totalorder %s621_s4, %s621_s4 }
 0x1b0   :  { %p628_p4 = por %p627_p3, %p626_p2 }
 0x1b2   :  { %p629_p5 = pnand %p628_p4, %p622_p1 }
 0x1b4   :  { %632 = shalt.err (!%p629_p5)
}
 0x1b5   :  { %460 = dma.vmem_to_hbm [thread:$0]  %s458_s27, 32, %s744_s2, [#allocation4]  }
 0x1b6   :  { %645 = dma.done.wait [#allocation4], 32  }
 0x1b7   :  { %646 = vsyncadd [#allocation4], 4294967264 }
 0x1b8   :  { %647 = dma.done.wait [#allocation9], 32  }
 0x1b9   :  { %648 = vsyncadd [#allocation9], 4294967264 }
 0x1ba   :  { %477 = vsyncpa [#allocation3], 1 }
 0x1bb   :  { %478 = vsyncpa [#allocation6], 1 }
 0x1bc   :  { %479 = vsyncpa [#allocation4], 1 }
 0x1bd   :  { %480 = vsyncpa [#allocation9], 1 }

</bundles_post_ra>
